<compile_context>
chip_gen: v7x
topology: tpu7x:2x2x1
jax: 0.10.0
libtpu: 0.0.40
codegen_flags: <defaults>
</compile_context>

<pallas_src>
import math

import jax
import jax.numpy as jnp
from jax.experimental import pallas as pl
from jax.experimental.pallas import tpu as pltpu

_LANE = 128        # f32 lane width
_SUBLANE = 8       # f32 sublane height
_NEG_SLOPE = 0.01  # PyTorch LeakyReLU default


def _round_up(x, m):
    return (x + m - 1) // m * m


def _choose_batch_tile(B, max_tile=512, step_overhead_rows=64):
    """Pick TILE_B (multiple of 8, <= max_tile) minimizing padded-rows + per-step cost.

    Cost model: total_rows_processed + grid_steps * step_overhead_rows, where
    step_overhead_rows converts the ~0.35 us per-grid-step overhead into an
    equivalent number of batch rows.  Ties break toward the larger tile.
    """
    best = None
    for tile in range(_SUBLANE, max_tile + 1, _SUBLANE):
        grid = -(-B // tile)                     # cdiv
        b_pad = grid * tile
        cost = b_pad + grid * step_overhead_rows
        if best is None or cost < best[0] or (cost == best[0] and tile > best[1]):
            best = (cost, tile, b_pad, grid)
    _, tile_b, b_pad, grid = best
    return tile_b, b_pad, grid


def _time_embed_kernel(t_ref, freq_ref, w1_ref, b1_ref, w2_ref, b2_ref, o_ref):
    # t_ref:    (TILE_B, 1)           time steps (streamed per grid step)
    # freq_ref: (1, half_dim)         sinusoidal frequencies          (resident)
    # w1_ref:   (2*half_dim, N_pad)   first Linear W^T, rows = [sin-half; cos-half]
    # b1_ref:   (1, N_pad)
    # w2_ref:   (N_pad, N_pad)        second Linear W^T
    # b2_ref:   (1, N_pad)
    # o_ref:    (TILE_B, N_pad)       lane-dense (N_pad % 128 == 0) output tile
    half_dim = freq_ref.shape[1]
    tile_b = t_ref.shape[0]
    n_pad = b1_ref.shape[1]

    t = t_ref[...]                        # (TILE_B, 1)
    arg = t * freq_ref[...]               # (TILE_B, half_dim), broadcast
    sin_f = jnp.sin(arg)
    cos_f = jnp.cos(arg)

    if half_dim <= 8:
        # Tiny contraction (K = half_dim): keep the first Linear off the MXU.
        # Unrolled rank-1 broadcast multiplies run on otherwise-idle VALU slots and
        # avoid a near-empty MXU push/pop on the critical path.
        h = jnp.broadcast_to(b1_ref[...], (tile_b, n_pad))     # hoisted, once
        for k in range(half_dim):
            h = h + sin_f[:, k:k + 1] * w1_ref[k:k + 1, :]
            h = h + cos_f[:, k:k + 1] * w1_ref[half_dim + k:half_dim + k + 1, :]
    else:
        # Larger half_dim: single fused MXU pass over cat(sin, cos).
        feat = jnp.concatenate([sin_f, cos_f], axis=-1)        # (TILE_B, 2*half_dim)
        h = (jnp.dot(feat, w1_ref[...], preferred_element_type=jnp.float32)
             + b1_ref[...])

    # LeakyReLU (negative_slope = 0.01)
    h = jnp.where(h > 0, h, _NEG_SLOPE * h)

    # Second Linear on the MXU with f32 accumulation.
    out = jnp.dot(h, w2_ref[...], preferred_element_type=jnp.float32) + b2_ref[...]
    o_ref[...] = out.astype(o_ref.dtype)


def sinusoidal_time_embedding(t, kernel_params, n_channels):
    """t: (B, 1) float32 -> (B, n_channels) float32 (kernel_params are padded)."""
    freq = kernel_params["freq"]   # (1, half_dim)
    w1 = kernel_params["w1"]       # (2*half_dim, N_pad)
    b1 = kernel_params["b1"]       # (1, N_pad)
    w2 = kernel_params["w2"]       # (N_pad, N_pad)
    b2 = kernel_params["b2"]       # (1, N_pad)

    B = t.shape[0]
    half_dim = freq.shape[1]
    n_pad = w1.shape[1]

    # Batch tile: multiple of 8 sublanes; balances pad waste vs. per-step overhead.
    tile_b, b_pad, n_steps = _choose_batch_tile(B)
    if b_pad != B:
        t = jnp.pad(t, ((0, b_pad - B), (0, 0)))
    grid = (n_steps,)

    flops = 2 * B * (2 * half_dim + n_channels) * n_channels
    bytes_accessed = 4 * (w1.size + b1.size + w2.size + b2.size + freq.size
                          + B * (1 + n_channels))
    cost = pl.CostEstimate(flops=flops,
                           transcendentals=2 * B * half_dim,
                           bytes_accessed=bytes_accessed)

    # Raise the scoped-VMEM limit only if the resident weights + double-buffered
    # streamed tiles would exceed the 32 MiB default (capped at v7x's 64 MiB).
    vmem_est = 4 * (2 * tile_b * 1                      # t, double-buffered
                    + 2 * tile_b * n_pad                # out, double-buffered
                    + 2 * (freq.size + w1.size + b1.size + w2.size + b2.size))
    vmem_limit = None
    if vmem_est > (32 << 20):
        vmem_limit = min(int(vmem_est * 5 // 4), 64 << 20)

    out = pl.pallas_call(
        _time_embed_kernel,
        out_shape=jax.ShapeDtypeStruct((b_pad, n_pad), jnp.float32),
        grid=grid,
        in_specs=[
            pl.BlockSpec((tile_b, 1), lambda i: (i, 0)),              # t (streamed)
            pl.BlockSpec((1, half_dim), lambda i: (0, 0)),            # freq (resident)
            pl.BlockSpec((2 * half_dim, n_pad), lambda i: (0, 0)),    # w1   (resident)
            pl.BlockSpec((1, n_pad), lambda i: (0, 0)),               # b1   (resident)
            pl.BlockSpec((n_pad, n_pad), lambda i: (0, 0)),           # w2   (resident)
            pl.BlockSpec((1, n_pad), lambda i: (0, 0)),               # b2   (resident)
        ],
        out_specs=pl.BlockSpec((tile_b, n_pad), lambda i: (i, 0)),
        compiler_params=pltpu.CompilerParams(
            dimension_semantics=("parallel",),
            vmem_limit_bytes=vmem_limit),
        cost_estimate=cost,
    )(t, freq, w1, b1, w2, b2)

    # Slice off batch padding and the lane padding of the feature dim.
    return out[:B, :n_channels]


def make_params(key, n_channels):
    """Deterministic synthetic parameters matching the PyTorch module's shapes.

    Weights are stored as (in_features, out_features) == W.T so that both the kernel
    and the reference compute x @ W + b directly.
    """
    assert n_channels % 8 == 0 and n_channels >= 16, (
        "n_channels must be a multiple of 8 and >= 16 (half_dim >= 2)")
    half_dim = n_channels // 8
    in1 = n_channels // 4  # first Linear in_features (== 2 * half_dim)

    # exp(arange(half_dim) * -log(10000)/(half_dim-1))
    freq = jnp.exp(
        jnp.arange(half_dim, dtype=jnp.float32)
        * -(math.log(10000.0) / (half_dim - 1))
    ).reshape(1, half_dim)

    k1, k2, k3, k4 = jax.random.split(key, 4)
    lim1 = 1.0 / math.sqrt(in1)
    lim2 = 1.0 / math.sqrt(n_channels)
    w1 = jax.random.uniform(k1, (in1, n_channels), jnp.float32, -lim1, lim1)
    b1 = jax.random.uniform(k2, (1, n_channels), jnp.float32, -lim1, lim1)
    w2 = jax.random.uniform(k3, (n_channels, n_channels), jnp.float32, -lim2, lim2)
    b2 = jax.random.uniform(k4, (1, n_channels), jnp.float32, -lim2, lim2)
    return {"freq": freq, "w1": w1, "b1": b1, "w2": w2, "b2": b2}


def prepare_kernel_params(params, n_channels):
    """Zero-pad the output feature dim to a multiple of 128 (lane-dense stores / DMA).

    Pad columns of w1/b1 produce h == 0 (LeakyReLU(0) == 0) and pad rows/cols of
    w2/b2 are zero, so padded output columns are exactly zero and the wrapper slices
    them off.  Done once, outside the hot path.  # TODO(synk): bf16 weights on v6e/v7x
    if n_channels grows large.
    """
    n_pad = _round_up(n_channels, _LANE)
    p = n_pad - n_channels
    return {
        "freq": params["freq"],
        "w1": jnp.pad(params["w1"], ((0, 0), (0, p))),
        "b1": jnp.pad(params["b1"], ((0, 0), (0, p))),
        "w2": jnp.pad(params["w2"], ((0, p), (0, p))),
        "b2": jnp.pad(params["b2"], ((0, 0), (0, p))),
    }


def reference(t, params):
    """Plain-JAX reference mirroring the PyTorch forward exactly (unpadded params)."""
    freq = params["freq"]                                   # (1, half_dim)
    arg = t[..., None] * freq[None, ...]                    # (B, 1, half_dim)
    emb = jnp.concatenate([jnp.sin(arg), jnp.cos(arg)], axis=-1)  # (B, 1, n/4)
    emb = emb.reshape(emb.shape[0], -1)                     # Flatten(start_dim=-2)
    h = emb @ params["w1"] + params["b1"]
    h = jnp.where(h > 0, h, _NEG_SLOPE * h)
    return h @ params["w2"] + params["b2"]


if __name__ == "__main__":
    n_channels = 32   # half_dim = 4, first Linear in_features = 8
    B = 8

    key = jax.random.PRNGKey(0)
    k_t, k_p = jax.random.split(key)
    t = jax.random.uniform(k_t, (B, 1), jnp.float32, 0.0, 1000.0)

    params = make_params(k_p, n_channels)
    kparams = prepare_kernel_params(params, n_channels)

    out = sinusoidal_time_embedding(t, kparams, n_channels)
    out = jax.block_until_ready(out)

    ref = reference(t, params)
    assert out.shape == (B, n_channels)
    assert jnp.allclose(out, ref, atol=1e-4, rtol=1e-4), "mismatch vs reference"

    print("KERNEL_OK")
</pallas_src>

<mosaic_0001>
module attributes {stable_mosaic.version = 11 : i64} {
  func.func @_time_embed_kernel(%arg0: i32, %arg1: memref<8x1xf32, #tpu.memory_space<vmem>>, %arg2: memref<1x4xf32, #tpu.memory_space<vmem>>, %arg3: memref<8x128xf32, #tpu.memory_space<vmem>>, %arg4: memref<1x128xf32, #tpu.memory_space<vmem>>, %arg5: memref<128x128xf32, #tpu.memory_space<vmem>>, %arg6: memref<1x128xf32, #tpu.memory_space<vmem>>, %arg7: memref<8x128xf32, #tpu.memory_space<vmem>>) attributes {dimension_semantics = [#tpu.dimension_semantics<parallel>], iteration_bounds = array<i64: 1>, scalar_prefetch = 0 : i64, scratch_operands = 0 : i64, tpu.core_type = #tpu.core_type<tc>, window_params = [{transform_indices = @transform_0, window_bounds = array<i64: 8, 1>}, {pipeline_mode = #tpu.pipeline_mode<synchronous>, transform_indices = @transform_1, window_bounds = array<i64: 1, 4>}, {pipeline_mode = #tpu.pipeline_mode<synchronous>, transform_indices = @transform_2, window_bounds = array<i64: 8, 128>}, {pipeline_mode = #tpu.pipeline_mode<synchronous>, transform_indices = @transform_3, window_bounds = array<i64: 1, 128>}, {pipeline_mode = #tpu.pipeline_mode<synchronous>, transform_indices = @transform_4, window_bounds = array<i64: 128, 128>}, {pipeline_mode = #tpu.pipeline_mode<synchronous>, transform_indices = @transform_5, window_bounds = array<i64: 1, 128>}, {transform_indices = @transform_6, window_bounds = array<i64: 8, 128>}]} {
    %c0 = arith.constant 0 : index
    %c0_0 = arith.constant 0 : index
    %0 = vector.load %arg1[%c0, %c0_0] : memref<8x1xf32, #tpu.memory_space<vmem>>, vector<8x1xf32>
    %c0_1 = arith.constant 0 : index
    %c0_2 = arith.constant 0 : index
    %1 = vector.load %arg2[%c0_1, %c0_2] : memref<1x4xf32, #tpu.memory_space<vmem>>, vector<1x4xf32>
    %2 = vector.broadcast %0 : vector<8x1xf32> to vector<8x4xf32>
    %3 = vector.broadcast %1 : vector<1x4xf32> to vector<8x4xf32>
    %4 = arith.mulf %2, %3 : vector<8x4xf32>
    %5 = math.sin %4 : vector<8x4xf32>
    %6 = math.cos %4 : vector<8x4xf32>
    %c0_3 = arith.constant 0 : index
    %c0_4 = arith.constant 0 : index
    %7 = vector.load %arg4[%c0_3, %c0_4] : memref<1x128xf32, #tpu.memory_space<vmem>>, vector<1x128xf32>
    %8 = vector.shape_cast %7 : vector<1x128xf32> to vector<1x128xf32>
    %9 = vector.broadcast %8 : vector<1x128xf32> to vector<8x128xf32>
    %10 = vector.extract_strided_slice %5 {offsets = [0, 0], sizes = [8, 1], strides = [1, 1]} : vector<8x4xf32> to vector<8x1xf32>
    %c0_5 = arith.constant 0 : index
    %c0_6 = arith.constant 0 : index
    %11 = vector.load %arg3[%c0_5, %c0_6] : memref<8x128xf32, #tpu.memory_space<vmem>>, vector<1x128xf32>
    %12 = vector.broadcast %10 : vector<8x1xf32> to vector<8x128xf32>
    %13 = vector.broadcast %11 : vector<1x128xf32> to vector<8x128xf32>
    %14 = arith.mulf %12, %13 : vector<8x128xf32>
    %15 = arith.addf %9, %14 : vector<8x128xf32>
    %16 = vector.extract_strided_slice %6 {offsets = [0, 0], sizes = [8, 1], strides = [1, 1]} : vector<8x4xf32> to vector<8x1xf32>
    %c4 = arith.constant 4 : index
    %c0_7 = arith.constant 0 : index
    %17 = vector.load %arg3[%c4, %c0_7] : memref<8x128xf32, #tpu.memory_space<vmem>>, vector<1x128xf32>
    %18 = vector.broadcast %16 : vector<8x1xf32> to vector<8x128xf32>
    %19 = vector.broadcast %17 : vector<1x128xf32> to vector<8x128xf32>
    %20 = arith.mulf %18, %19 : vector<8x128xf32>
    %21 = arith.addf %15, %20 : vector<8x128xf32>
    %22 = vector.extract_strided_slice %5 {offsets = [0, 1], sizes = [8, 1], strides = [1, 1]} : vector<8x4xf32> to vector<8x1xf32>
    %c1 = arith.constant 1 : index
    %c0_8 = arith.constant 0 : index
    %23 = vector.load %arg3[%c1, %c0_8] : memref<8x128xf32, #tpu.memory_space<vmem>>, vector<1x128xf32>
    %24 = vector.broadcast %22 : vector<8x1xf32> to vector<8x128xf32>
    %25 = vector.broadcast %23 : vector<1x128xf32> to vector<8x128xf32>
    %26 = arith.mulf %24, %25 : vector<8x128xf32>
    %27 = arith.addf %21, %26 : vector<8x128xf32>
    %28 = vector.extract_strided_slice %6 {offsets = [0, 1], sizes = [8, 1], strides = [1, 1]} : vector<8x4xf32> to vector<8x1xf32>
    %c5 = arith.constant 5 : index
    %c0_9 = arith.constant 0 : index
    %29 = vector.load %arg3[%c5, %c0_9] : memref<8x128xf32, #tpu.memory_space<vmem>>, vector<1x128xf32>
    %30 = vector.broadcast %28 : vector<8x1xf32> to vector<8x128xf32>
    %31 = vector.broadcast %29 : vector<1x128xf32> to vector<8x128xf32>
    %32 = arith.mulf %30, %31 : vector<8x128xf32>
    %33 = arith.addf %27, %32 : vector<8x128xf32>
    %34 = vector.extract_strided_slice %5 {offsets = [0, 2], sizes = [8, 1], strides = [1, 1]} : vector<8x4xf32> to vector<8x1xf32>
    %c2 = arith.constant 2 : index
    %c0_10 = arith.constant 0 : index
    %35 = vector.load %arg3[%c2, %c0_10] : memref<8x128xf32, #tpu.memory_space<vmem>>, vector<1x128xf32>
    %36 = vector.broadcast %34 : vector<8x1xf32> to vector<8x128xf32>
    %37 = vector.broadcast %35 : vector<1x128xf32> to vector<8x128xf32>
    %38 = arith.mulf %36, %37 : vector<8x128xf32>
    %39 = arith.addf %33, %38 : vector<8x128xf32>
    %40 = vector.extract_strided_slice %6 {offsets = [0, 2], sizes = [8, 1], strides = [1, 1]} : vector<8x4xf32> to vector<8x1xf32>
    %c6 = arith.constant 6 : index
    %c0_11 = arith.constant 0 : index
    %41 = vector.load %arg3[%c6, %c0_11] : memref<8x128xf32, #tpu.memory_space<vmem>>, vector<1x128xf32>
    %42 = vector.broadcast %40 : vector<8x1xf32> to vector<8x128xf32>
    %43 = vector.broadcast %41 : vector<1x128xf32> to vector<8x128xf32>
    %44 = arith.mulf %42, %43 : vector<8x128xf32>
    %45 = arith.addf %39, %44 : vector<8x128xf32>
    %46 = vector.extract_strided_slice %5 {offsets = [0, 3], sizes = [8, 1], strides = [1, 1]} : vector<8x4xf32> to vector<8x1xf32>
    %c3 = arith.constant 3 : index
    %c0_12 = arith.constant 0 : index
    %47 = vector.load %arg3[%c3, %c0_12] : memref<8x128xf32, #tpu.memory_space<vmem>>, vector<1x128xf32>
    %48 = vector.broadcast %46 : vector<8x1xf32> to vector<8x128xf32>
    %49 = vector.broadcast %47 : vector<1x128xf32> to vector<8x128xf32>
    %50 = arith.mulf %48, %49 : vector<8x128xf32>
    %51 = arith.addf %45, %50 : vector<8x128xf32>
    %52 = vector.extract_strided_slice %6 {offsets = [0, 3], sizes = [8, 1], strides = [1, 1]} : vector<8x4xf32> to vector<8x1xf32>
    %c7 = arith.constant 7 : index
    %c0_13 = arith.constant 0 : index
    %53 = vector.load %arg3[%c7, %c0_13] : memref<8x128xf32, #tpu.memory_space<vmem>>, vector<1x128xf32>
    %54 = vector.broadcast %52 : vector<8x1xf32> to vector<8x128xf32>
    %55 = vector.broadcast %53 : vector<1x128xf32> to vector<8x128xf32>
    %56 = arith.mulf %54, %55 : vector<8x128xf32>
    %57 = arith.addf %51, %56 : vector<8x128xf32>
    %cst = arith.constant 0.000000e+00 : f32
    %58 = vector.broadcast %cst : f32 to vector<8x128xf32>
    %59 = arith.cmpf ogt, %57, %58 : vector<8x128xf32>
    %cst_14 = arith.constant 0.00999999977 : f32
    %60 = vector.broadcast %cst_14 : f32 to vector<8x128xf32>
    %61 = arith.mulf %60, %57 : vector<8x128xf32>
    %62 = arith.select %59, %57, %61 : vector<8x128xi1>, vector<8x128xf32>
    %c0_15 = arith.constant 0 : index
    %c0_16 = arith.constant 0 : index
    %63 = vector.load %arg5[%c0_15, %c0_16] : memref<128x128xf32, #tpu.memory_space<vmem>>, vector<128x128xf32>
    %cst_17 = arith.constant dense<0.000000e+00> : vector<8x128xf32>
    %64 = tpu.matmul %62, %63, %cst_17 {dimension_numbers = #tpu.dot_dimension_numbers<[1], [0], [0], [1], [0, 0, 1, 1], [], []>} : vector<8x128xf32>, vector<128x128xf32>, vector<8x128xf32> -> vector<8x128xf32>
    %c0_18 = arith.constant 0 : index
    %c0_19 = arith.constant 0 : index
    %65 = vector.load %arg6[%c0_18, %c0_19] : memref<1x128xf32, #tpu.memory_space<vmem>>, vector<1x128xf32>
    %66 = vector.broadcast %65 : vector<1x128xf32> to vector<8x128xf32>
    %67 = arith.addf %64, %66 : vector<8x128xf32>
    %c0_20 = arith.constant 0 : index
    %c0_21 = arith.constant 0 : index
    %68 = vector.load %arg7[%c0_20, %c0_21] : memref<8x128xf32, #tpu.memory_space<vmem>>, vector<8x128xf32>
    tpu.vector_store %arg7[%c0_20, %c0_21], %67 {strides = array<i32>} : memref<8x128xf32, #tpu.memory_space<vmem>>, vector<8x128xf32>,
    return
  }
  func.func @transform_0(%arg0: i32) -> (i32, i32) {
    %c0_i32 = arith.constant 0 : i32
    %c0_i32_0 = arith.constant 0 : i32
    return %arg0, %c0_i32 : i32, i32
  }
  func.func @transform_1(%arg0: i32) -> (i32, i32) {
    %c0_i32 = arith.constant 0 : i32
    %c0_i32_0 = arith.constant 0 : i32
    %c0_i32_1 = arith.constant 0 : i32
    return %c0_i32, %c0_i32_0 : i32, i32
  }
  func.func @transform_2(%arg0: i32) -> (i32, i32) {
    %c0_i32 = arith.constant 0 : i32
    %c0_i32_0 = arith.constant 0 : i32
    %c0_i32_1 = arith.constant 0 : i32
    return %c0_i32, %c0_i32_0 : i32, i32
  }
  func.func @transform_3(%arg0: i32) -> (i32, i32) {
    %c0_i32 = arith.constant 0 : i32
    %c0_i32_0 = arith.constant 0 : i32
    %c0_i32_1 = arith.constant 0 : i32
    return %c0_i32, %c0_i32_0 : i32, i32
  }
  func.func @transform_4(%arg0: i32) -> (i32, i32) {
    %c0_i32 = arith.constant 0 : i32
    %c0_i32_0 = arith.constant 0 : i32
    %c0_i32_1 = arith.constant 0 : i32
    return %c0_i32, %c0_i32_0 : i32, i32
  }
  func.func @transform_5(%arg0: i32) -> (i32, i32) {
    %c0_i32 = arith.constant 0 : i32
    %c0_i32_0 = arith.constant 0 : i32
    %c0_i32_1 = arith.constant 0 : i32
    return %c0_i32, %c0_i32_0 : i32, i32
  }
  func.func @transform_6(%arg0: i32) -> (i32, i32) {
    %c0_i32 = arith.constant 0 : i32
    %c0_i32_0 = arith.constant 0 : i32
    return %arg0, %c0_i32 : i32, i32
  }
}

</mosaic_0001>

<bundles_post_ra>
// kernel: tpu_custom_call.1
= control target key start
LH: loop header
LB: loop body
LE: loop exit
PB: predicated region body
PF: predicated region fallthrough
CT: control target
= control target key end

     0   :  { %11 = vsyncpa [#allocation3], 0  ;;  %s784_s0 = inlined_call_operand.vmem [shape: f32[8,1], index: 0, kind: input, shape index: {}]   ;;  %s785_s1 = inlined_call_operand.vmem [shape: f32[1,4], index: 1, kind: input, shape index: {}]   ;;  %s786_s2 = inlined_call_operand.vmem [shape: f32[8,128], index: 2, kind: input, shape index: {}]   ;;  %s787_s3 = inlined_call_operand.vmem [shape: f32[1,128], index: 3, kind: input, shape index: {}]   ;;  %s788_s4 = inlined_call_operand.hbm [shape: f32[128,128], index: 4, kind: input, shape index: {}]   ;;  %s789_s5 = inlined_call_operand.vmem [shape: f32[1,128], index: 5, kind: input, shape index: {}]   ;;  %s790_s6 = inlined_call_operand.hbm [shape: f32[8,128], index: 6, kind: output, shape index: {}]  }
   0x1   :  { %12 = vsyncpa [#allocation4], 0  ;;  %s643_s21 = smov [#allocation2]   ;;  %s595_s25 = scalar_lea.hbm %s788_s4, 2048 }
   0x2   :  { %s26_s22 = sshll.u32 %s643_s21, 4  ;;  %p596_p0 = scmp.ne.s32.totalorder %s788_s4, %s595_s25  ;;  %s27_s22 = int_to_ptr.vmem [resolvable:$true] %s26_s22 }
   0x3   :  { %p599_p1 = scmp.lt.u32.totalorder %s595_s25, %s788_s4 }
   0x5   :  { %p601_p2 = pnand %p599_p1, %p596_p0 }
   0x7   :  { %604 = shalt.err (!%p601_p2)
}
   0x8   :  { %s605_s30 = scalar_lea.vmem %s27_s22, 2048  ;;  %p610_p4 = scmp.lt.s32.totalorder %s27_s22, %s27_s22 }
   0x9   :  { %p606_p3 = scmp.ne.s32.totalorder %s27_s22, %s605_s30  ;;  %p611_p5 = scmp.lt.s32.totalorder %s605_s30, %s605_s30 }
   0xb   :  { %p612_p6 = por %p611_p5, %p610_p4 }
   0xd   :  { %p613_p7 = pnand %p612_p6, %p606_p3 }
   0xf   :  { %616 = shalt.err (!%p613_p7)
}
  0x10   :  { %s644_s7 = smov 128   ;;  %s645_s8 = smov 8  }
  0x11   :  { %32 = dma.hbm_to_vmem [thread:$0]  %s788_s4, 2048, %s27_s22, [#allocation3], %s644_s7, %s644_s7, %s645_s8  }
  0x12   :  { %639 = dma.done.wait [#allocation3], 2048  }
  0x13   :  { %640 = vsyncadd [#allocation3], 4294965248  ;;  %v646_v0 = vmov 0   ;;  %v38_v1 = vld [vmem:[%s784_s0] sm:$0xff]  ;;  %v359_v2 = vld [vmem:[#allocation2] sm:$0xff]  ;;  %v647_v5 = vmov 0.0|0.0  }
  0x14   :  { %584 = vset.pattern.permute.xlu0 %v646_v0  ;;  %585 = vset.pattern.permute.xlu1 %v646_v0  ;;  %v360_v3 = vld [vmem:[#allocation2 + $0x8] sm:$0xff]  ;;  %v361_v4 = vld [vmem:[#allocation2 + $0x10] sm:$0xff]  ;;  %v362_v7 = vld [vmem:[#allocation2 + $0x18] sm:$0xff]  ;;  %v648_v22 = vmov 683565275   ;;  %s659_s7 = smov [#allocation5]  }
  0x15   :  { %42 = vperm.xlu0 %584, %v38_v1   ;;  %539 = vmatprep.subr.bf16.mxu0 %v647_v5  ;;  %v540_v6 = vpack.c.bf16 %v360_v3, %v359_v2  ;;  %v543_v8 = vpack.c.bf16 %v362_v7, %v361_v4  ;;  %v468_v9 = vld [vmem:[%s785_s1] ss:$0 sm:$0xff]  ;;  %v649_v24 = vmov 2475754826   ;;  %v650_v27 = vmov 2131351028  }
  0x16   :  { %v651_v30 = vmov 2102212464   ;;  %v652_v33 = vmov 920167782   ;;  %v653_v36 = vmov 1326507024  }
  0x17   :  { %541 = vmatpush3.bf16.msra.mxu0 %v540_v6  ;;  %s459_s8 = sshll.u32 %s659_s7, 4  ;;  %s460_s8 = int_to_ptr.vmem [resolvable:$true] %s459_s8 }
  0x18   :  { %542 = vmatprep.subr.bf16.mxu0 %v647_v5  ;;  %p622_p9 = scmp.lt.s32.totalorder %s460_s8, %s460_s8 }
  0x1b   :  { %544 = vmatpush3.bf16.msra.mxu0 %v543_v8 }
  0x1c   :  { %545 = vmatprep.subr.bf16.mxu0 %v647_v5 }
  0x94   :  { %v43_v10 = vpop.permute.xlu0 %42 }
  0x95   :  { %v716_v11 = vmul.f32 %v468_v9, %v43_v10 }
  0x97   :  { %v55_v12 = vand.u32 2139095040, %v716_v11  ;;  %v52_v16 = vand.u32 2147483647, %v716_v11  ;;  %vm54_vm7 = vcmp.lt.s32.totalorder %v716_v11, 0  ;;  %vm144_vm15 = vweird.f32 %v716_v11 }
  0x99   :  { %v56_v13 = vshrl.u32 %v55_v12, 23  ;;  %v59_v19 = vand.u32 8388607, %v52_v16  ;;  %vm53_vm8 = vcmp.le.f32.partialorder %v52_v16, 0.7853982 }
  0x9b   :  { %v469_v14 = vadd.s32 4294967169, %v56_v13  ;;  %v60_v38 = vor.u32 8388608, %v59_v19 }
  0x9d   :  { %v62_v15 = vadd.s32 1, %v469_v14  ;;  %v100_v52 = vshll.u32 %v60_v38, 8 }
  0x9f   :  { %vm63_vm0 = vcmp.gt.s32.totalorder %v62_v15, 0 }
  0xa0   :  { %v64_v17 = vsel %vm63_vm0, %v62_v15, 0  ;;  %vm657_vm0 = vmmov 0  }
  0xa1   :  { %v66_v18 = vand.u32 31, %v64_v17  ;;  %v65_v21 = vshrl.u32 %v64_v17, 5 }
  0xa3   :  { %v67_v20 = vsub.s32 32, %v66_v18  ;;  %v69_v23 = vshll.u32 %v648_v22, %v66_v18  ;;  %v72_v25 = vshll.u32 %v649_v24, %v66_v18  ;;  %v75_v29 = vshll.u32 %v650_v27, %v66_v18 }
  0xa4   :  { %v78_v32 = vshll.u32 %v651_v30, %v66_v18  ;;  %v81_v35 = vshll.u32 %v652_v33, %v66_v18  ;;  %vm84_vm1 = vcmp.lt.s32.totalorder %v65_v21, 1  ;;  %vm87_vm2 = vcmp.lt.s32.totalorder %v65_v21, 4 }
  0xa5   :  { %v70_v26 = vshrl.u32 %v649_v24, %v67_v20  ;;  %v73_v28 = vshrl.u32 %v650_v27, %v67_v20  ;;  %v76_v31 = vshrl.u32 %v651_v30, %v67_v20  ;;  %v79_v34 = vshrl.u32 %v652_v33, %v67_v20 }
  0xa6   :  { %v82_v37 = vshrl.u32 %v653_v36, %v67_v20  ;;  %v68_v47 = vshrl.u32 %v648_v22, %v67_v20  ;;  %vm86_vm3 = vcmp.lt.s32.totalorder %v65_v21, 3  ;;  %vm85_vm4 = vcmp.lt.s32.totalorder %v65_v21, 2 }
  0xa7   :  { %v71_v39 = vor.u32 %v70_v26, %v69_v23  ;;  %v74_v40 = vor.u32 %v73_v28, %v72_v25  ;;  %v77_v41 = vor.u32 %v76_v31, %v75_v29  ;;  %v80_v42 = vor.u32 %v79_v34, %v78_v32 }
  0xa8   :  { %v83_v43 = vor.u32 %v82_v37, %v81_v35 }
  0xa9   :  { %v89_v44 = vsel %vm87_vm2, %v77_v41, 2102212464  ;;  %v92_v45 = vsel %vm84_vm1, %v71_v39, %v74_v40  ;;  %v96_v46 = vsel %vm84_vm1, %v74_v40, %v77_v41  ;;  %v93_v48 = vsel %vm87_vm2, %v80_v42, 920167782 }
  0xaa   :  { %v97_v49 = vsel %vm87_vm2, %v83_v43, 1326507024  ;;  %v94_v50 = vsel %vm86_vm3, %v77_v41, %v93_v48  ;;  %v88_v53 = vsel %vm84_vm1, %v68_v47, %v71_v39  ;;  %v90_v54 = vsel %vm86_vm3, %v74_v40, %v89_v44  ;;  %v364_v47 = vld [vmem:[#allocation2 + $0x28] sm:$0xff] }
  0xab   :  { %v98_v51 = vsel %vm86_vm3, %v80_v42, %v97_v49  ;;  %v95_v55 = vsel %vm85_vm4, %v92_v45, %v94_v50  ;;  %v91_v61 = vsel %vm85_vm4, %v88_v53, %v90_v54  ;;  %v654_v49 = vmov 1   ;;  %v365_v50 = vld [vmem:[#allocation2 + $0x30] sm:$0xff]  ;;  %v367_v54 = vld [vmem:[#allocation2 + $0x40] sm:$0xff] }
  0xac   :  { %v99_v56 = vsel %vm85_vm4, %v96_v46, %v98_v51  ;;  %v725_v59 = vmul.u32.u64.low %v100_v52, %v95_v55  ;;  %v726_v60 = vmul.u32.u64.high %v100_v52, %v95_v55, %v725_v59  ;;  %v107_v63 = vmul.u32 %v100_v52, %v91_v61  ;;  %v363_v46 = vld [vmem:[#allocation2 + $0x20] sm:$0xff]  ;;  %v366_v51 = vld [vmem:[#allocation2 + $0x38] sm:$0xff]  ;;  %v368_v55 = vld [vmem:[#allocation2 + $0x48] sm:$0xff] }
  0xad   :  { %v722_v57 = vmul.u32.u64.low %v100_v52, %v99_v56  ;;  %v723_v58 = vmul.u32.u64.high %v100_v52, %v99_v56, %v722_v57  ;;  %v546_v48 = vpack.c.bf16 %v364_v47, %v363_v46  ;;  %v655_v52 = vmov 2   ;;  %v372_v61 = vld [vmem:[#allocation2 + $0x68] sm:$0xff] }
  0xae   :  { %v110_v62 = vadd.s32 1, %v726_v60  ;;  %v656_v53 = vmov 3   ;;  %v552_v56 = vpack.c.bf16 %v368_v55, %v367_v54  ;;  %v369_v57 = vld [vmem:[#allocation2 + $0x50] sm:$0xff] }
  0xaf   :  { %vm109_vm5 = vc.u32 %v723_v58, %v725_v59  ;;  %v108_v13 = vadd.s32 %v725_v59, %v723_v58  ;;  %547 = vmatpush3.bf16.msra.mxu0 %v546_v48  ;;  %v370_v58 = vld [vmem:[#allocation2 + $0x58] sm:$0xff] }
  0xb0   :  { %v111_v0 = vsel %vm109_vm5, %v110_v62, %v726_v60  ;;  %548 = vmatprep.subr.bf16.mxu0 %v647_v5  ;;  %v555_v59 = vpack.c.bf16 %v370_v58, %v369_v57  ;;  %v371_v60 = vld [vmem:[#allocation2 + $0x60] sm:$0xff] }
  0xb1   :  { %v112_v1 = vadd.s32 %v111_v0, %v107_v63  ;;  %v558_v62 = vpack.c.bf16 %v372_v61, %v371_v60  ;;  %v373_v63 = vld [vmem:[#allocation2 + $0x70] sm:$0xff]  ;;  %v374_v0 = vld [vmem:[#allocation2 + $0x78] sm:$0xff] }
  0xb3   :  { %v113_v2 = vadd.s32 536870912, %v112_v1 }
  0xb5   :  { %v114_v3 = vshrl.u32 %v113_v2, 30  ;;  %v561_v2 = vpack.c.bf16 %v374_v0, %v373_v63 }
  0xb7   :  { %v115_v4 = vshll.u32 %v114_v3, 30  ;;  %v138_v26 = vsub.s32 4, %v114_v3 }
  0xb9   :  { %v116_v6 = vsub.s32 %v112_v1, %v115_v4  ;;  %v139_v29 = vsel %vm54_vm7, %v138_v26, %v114_v3  ;;  %v658_v1 = vmov 0.0   ;;  %v478_v3 = vld [vmem:[%s786_s2] ss:$0 sm:$0xff]  ;;  %v479_v4 = vld [vmem:[%s786_s2 + $0x4] ss:$0 sm:$0xff] }
  0xba   :  { %v141_v31 = vsel %vm53_vm8, 0, %v139_v29  ;;  %536 = vmatprep.mubr.msk.f32.mxu0 %vm657_vm0, %v658_v1  ;;  %v484_v26 = vld [vmem:[%s786_s2 + $0x3] ss:$0 sm:$0xff] }
  0xbb   :  { %v118_v7 = vsub.s32 0, %v116_v6  ;;  %v145_v32 = vadd.s32 3, %v141_v31  ;;  %v249_v33 = vand.u32 3, %v141_v31 }
  0xbd   :  { %v470_v8 = vmin.u32 %v118_v7, %v116_v6  ;;  %v146_v34 = vand.u32 3, %v145_v32  ;;  %vm254_vm9 = vcmp.eq.s32.totalorder %v249_v33, 2  ;;  %vm251_vm11 = vcmp.eq.s32.totalorder %v249_v33, 0  ;;  %v477_v7 = vld [vmem:[%s787_s3] ss:$0 sm:$0xff] }
  0xbe   :  { %vm250_vm13 = vcmp.lt.s32.totalorder %v249_v33, 2  ;;  %v485_v33 = vld [vmem:[%s786_s2 + $0x7] ss:$0 sm:$0xff] }
  0xbf   :  { %v120_v9 = vclz %v470_v8  ;;  %vm151_vm10 = vcmp.eq.s32.totalorder %v146_v34, 2  ;;  %vm148_vm12 = vcmp.eq.s32.totalorder %v146_v34, 0  ;;  %vm147_vm14 = vcmp.lt.s32.totalorder %v146_v34, 2 }
  0xc1   :  { %v471_v10 = vadd.s32 4294967294, %v120_v9 }
  0xc3   :  { %vm472_vm6 = vcmp.lt.s32.totalorder %v471_v10, 0 }
  0xc4   :  { %v123_v12 = vsel %vm472_vm6, 0, %v471_v10 }
  0xc5   :  { %v124_v14 = vsub.s32 32, %v123_v12  ;;  %v128_v15 = vsub.s32 4294967266, %v123_v12  ;;  %v125_v17 = vshll.u32 %v116_v6, %v123_v12 }
  0xc7   :  { %v126_v18 = vshrl.u32 %v108_v13, %v124_v14  ;;  %v129_v19 = vadd.s32 127, %v128_v15 }
  0xc9   :  { %v127_v20 = vor.u32 %v126_v18, %v125_v17  ;;  %v130_v21 = vshll.u32 %v129_v19, 23  ;;  %v481_v17 = vld [vmem:[%s786_s2 + $0x5] ss:$0 sm:$0xff] }
  0xcb   :  { %v131_v22 = vor.u32 4788187, %v130_v21  ;;  %v134_v24 = vcvt.s32.f32 %v127_v20  ;;  %v482_v20 = vld [vmem:[%s786_s2 + $0x2] ss:$0 sm:$0xff] }
  0xcd   :  { %v132_v23 = vand.u32 2147483647, %v131_v22 }
  0xcf   :  { %v135_v25 = vmul.f32 %v134_v24, %v132_v23 }
  0xd1   :  { %v136_v27 = vxor.u32 2147483648, %v135_v25 }
  0xd3   :  { %v137_v28 = vsel %vm54_vm7, %v136_v27, %v135_v25  ;;  %v483_v25 = vld [vmem:[%s786_s2 + $0x6] ss:$0 sm:$0xff] }
  0xd4   :  { %v140_v30 = vsel %vm53_vm8, %v716_v11, %v137_v28  ;;  %v549_v11 = vpack.c.bf16 %v366_v51, %v365_v50 }
  0xd5   :  { %591 = vcosq.f32 %v140_v30 }
  0xd6   :  { %593 = vsinq.f32 %v140_v30  ;;  %550 = vmatpush3.bf16.msra.mxu0 %v549_v11 }
  0xd7   :  { %551 = vmatprep.subr.bf16.mxu0 %v647_v5 }
  0xda   :  { %553 = vmatpush3.bf16.msra.mxu0 %v552_v56 }
  0xdb   :  { %554 = vmatprep.subr.bf16.mxu0 %v647_v5 }
  0xde   :  { %556 = vmatpush3.bf16.msra.mxu0 %v555_v59 }
  0xdf   :  { %v592_v35 = vpop.eup %591  ;;  %557 = vmatprep.subr.bf16.mxu0 %v647_v5 }
  0xe0   :  { %v594_v36 = vpop.eup %593  ;;  %v152_v37 = vxor.u32 2147483648, %v592_v35 }
  0xe1   :  { %v149_v38 = vxor.u32 2147483648, %v594_v36 }
  0xe2   :  { %v256_v39 = vsel %vm254_vm9, %v152_v37, %v594_v36  ;;  %v153_v16 = vsel %vm151_vm10, %v152_v37, %v594_v36  ;;  %559 = vmatpush3.bf16.msra.mxu0 %v558_v62 }
  0xe3   :  { %v253_v40 = vsel %vm251_vm11, %v592_v35, %v149_v38  ;;  %v150_v41 = vsel %vm148_vm12, %v592_v35, %v149_v38  ;;  %560 = vmatprep.subr.bf16.mxu0 %v647_v5  ;;  %v480_v5 = vld [vmem:[%s786_s2 + $0x1] ss:$0 sm:$0xff]  ;;  %s617_s2 = scalar_lea.vmem %s460_s8, 128 }
  0xe4   :  { %v257_v42 = vsel %vm250_vm13, %v253_v40, %v256_v39  ;;  %v154_v43 = vsel %vm147_vm14, %v150_v41, %v153_v16  ;;  %v486_v16 = vld [vmem:[%s789_s5] ss:$0 sm:$0xff]  ;;  %p618_p8 = scmp.ne.s32.totalorder %s460_s8, %s617_s2  ;;  %p623_p10 = scmp.lt.s32.totalorder %s617_s2, %s617_s2 }
  0xe5   :  { %v258_v44 = vsel %vm144_vm15, nan, %v257_v42  ;;  %v155_v45 = vsel %vm144_vm15, nan, %v154_v43 }
  0xe6   :  { %281 = vperm.xlu1 %585, %v258_v44   ;;  %269 = vperm.xlu0 %584, %v155_v45   ;;  %p624_p11 = por %p623_p10, %p622_p9 }
  0xe7   :  { %562 = vmatpush3.bf16.msra.mxu0 %v561_v2 }
  0xe8   :  { %p625_p12 = pnand %p624_p11, %p618_p8 }
  0xea   :  { %586 = vset.pattern.permute.xlu1 %v654_v49  ;;  %587 = vset.pattern.permute.xlu0 %v654_v49 }
  0xeb   :  { %292 = vperm.xlu1 %586, %v155_v45   ;;  %303 = vperm.xlu0 %587, %v258_v44  }
  0xef   :  { %588 = vset.pattern.permute.xlu1 %v655_v52  ;;  %589 = vset.pattern.permute.xlu0 %v656_v53 }
  0xf0   :  { %314 = vperm.xlu1 %588, %v155_v45   ;;  %336 = vperm.xlu0 %589, %v155_v45  }
  0xf4   :  { %325 = vperm.xlu1 %588, %v258_v44  }
  0xf8   :  { %590 = vset.pattern.permute.xlu1 %v656_v53 }
  0xf9   :  { %347 = vperm.xlu1 %590, %v258_v44  }
 0x165   :  { %v282_v6 = vpop.permute.xlu1 %281  ;;  %v270_v8 = vpop.permute.xlu0 %269 }
 0x166   :  { %v276_v9 = vmul.f32 %v478_v3, %v270_v8  ;;  %v288_v10 = vmul.f32 %v479_v4, %v282_v6 }
 0x168   :  { %v277_v12 = vadd.f32 %v477_v7, %v276_v9 }
 0x16a   :  { %v293_v13 = vpop.permute.xlu1 %292  ;;  %v289_v14 = vadd.f32 %v288_v10, %v277_v12  ;;  %v304_v18 = vpop.permute.xlu0 %303 }
 0x16b   :  { %v299_v15 = vmul.f32 %v480_v5, %v293_v13  ;;  %v310_v21 = vmul.f32 %v481_v17, %v304_v18 }
 0x16d   :  { %v300_v19 = vadd.f32 %v299_v15, %v289_v14 }
 0x16f   :  { %v315_v22 = vpop.permute.xlu1 %314  ;;  %v311_v23 = vadd.f32 %v310_v21, %v300_v19  ;;  %v337_v27 = vpop.permute.xlu0 %336 }
 0x170   :  { %v321_v24 = vmul.f32 %v482_v20, %v315_v22  ;;  %v343_v31 = vmul.f32 %v484_v26, %v337_v27 }
 0x172   :  { %v322_v29 = vadd.f32 %v321_v24, %v311_v23 }
 0x173   :  { %v326_v28 = vpop.permute.xlu1 %325 }
 0x174   :  { %v332_v30 = vmul.f32 %v483_v25, %v326_v28 }
 0x176   :  { %v333_v32 = vadd.f32 %v332_v30, %v322_v29 }
 0x178   :  { %v348_v34 = vpop.permute.xlu1 %347  ;;  %v344_v35 = vadd.f32 %v343_v31, %v333_v32 }
 0x179   :  { %v354_v36 = vmul.f32 %v485_v33, %v348_v34 }
 0x17b   :  { %v355_v37 = vadd.f32 %v354_v36, %v344_v35 }
 0x17d   :  { %vm356_vm1 = vcmp.gt.f32.partialorder %v355_v37, 0.0  ;;  %v357_v38 = vmul.f32 0.01, %v355_v37 }
 0x17f   :  { %v358_v39 = vsel %vm356_vm1, %v355_v37, %v357_v38 }
 0x180   :  { %537 = vmatmul.mubr.f32.vlgmr.msra.gmra.mrb[0].mxu0 %v358_v39 }
 0x253   :  { %v448_v40 = vpop.f32.mrb[0].mxu0 }
 0x254   :  { %v449_v41 = vadd.f32 %v486_v16, %v448_v40  ;;  %v538_v42 = vpop.f32.mrb[1].mxu0 }
 0x256   :  { %452 = vst [vmem:[#allocation5] sm:$0xff] %v449_v41 }
 0x257   :  { %628 = shalt.err (!%p625_p12)
}
 0x258   :  { %s629_s11 = scalar_lea.hbm %s790_s6, 128 }
 0x259   :  { %p630_p13 = scmp.ne.s32.totalorder %s790_s6, %s629_s11  ;;  %p633_p0 = scmp.lt.u32.totalorder %s629_s11, %s790_s6 }
 0x25b   :  { %p635_p1 = pnand %p633_p0, %p630_p13 }
 0x25d   :  { %638 = shalt.err (!%p635_p1)
}
 0x25e   :  { %462 = dma.vmem_to_hbm [thread:$0]  %s460_s8, 128, %s790_s6, [#allocation4]  }
 0x25f   :  { %641 = dma.done.wait [#allocation4], 128  }
 0x260   :  { %642 = vsyncadd [#allocation4], 4294967168 }
 0x261   :  { %466 = vsyncpa [#allocation3], 1 }
 0x262   :  { %467 = vsyncpa [#allocation4], 1 }

</bundles_post_ra>
